<compile_context>
chip_gen: v7x
topology: tpu7x:2x2x1
jax: 0.10.0
libtpu: 0.0.40
codegen_flags: <defaults>
</compile_context>

<pallas_src>
import math

import jax
import jax.numpy as jnp
from jax import lax
from jax.experimental import pallas as pl
from jax.experimental.pallas import tpu as pltpu

H1 = 128          # hidden width of the state / action branches
H2 = 128          # hidden width of the joint branch
HCAT = 2 * H1     # 256 = concat width (reference / param layout only)


def _cdiv(a, b):
    return (a + b - 1) // b


def _round_up(x, m):
    return (x + m - 1) // m * m


def _choose_tiling(batch, tile_cap=2048, min_steps=2):
    """Pick (tile_b, num_steps).

    tile_b is a multiple of 8 (f32 sublane), the grid has >= 2 steps whenever
    the batch allows it (v7x megacore sharding), tiles are capped at tile_cap
    rows, and padding is only up to ~one sublane group per step (instead of
    padding the whole batch to a multiple of a fixed tile).
    """
    b8 = _round_up(batch, 8)
    if b8 < 8 * min_steps:
        return b8, 1
    n = max(min_steps, _cdiv(b8, tile_cap))
    tile_b = _round_up(_cdiv(b8, n), 8)
    n = _cdiv(b8, tile_b)
    return tile_b, n


def critic_kernel(st_ref, ac_ref, ws_ref, bs_ref, wa_ref, ba_ref,
                  w1s_ref, w1a_ref, b1_ref, w2_ref, b2_ref, out_ref):
    nt = (((1,), (1,)), ((), ()))    # contract last dims:  A @ B^T
    nn = (((1,), (0,)), ((), ()))    # standard            A @ B

    # Layer 1, state branch: (H1, tile_b) = Ws(out,in) @ state_tile^T.
    hs = lax.dot_general(ws_ref[...], st_ref[...], nt,
                         preferred_element_type=jnp.float32)
    hs = jnp.maximum(hs + bs_ref[...], 0.0)

    # Layer 1, action branch: (H1, tile_b).
    ha = lax.dot_general(wa_ref[...], ac_ref[...], nt,
                         preferred_element_type=jnp.float32)
    ha = jnp.maximum(ha + ba_ref[...], 0.0)

    # Layer 2: torch.cat([h_s, h_a], 1) @ W1 as two accumulating K=128 dots.
    h = lax.dot_general(w1s_ref[...], hs, nn, preferred_element_type=jnp.float32)
    h = h + lax.dot_general(w1a_ref[...], ha, nn, preferred_element_type=jnp.float32)
    h = jnp.maximum(h + b1_ref[...], 0.0)                     # (H2, tile_b)

    # Output head: VPU multiply + sublane reduction -> lane-dense (1, tile_b).
    q = jnp.sum(h * w2_ref[...], axis=0, keepdims=True) + b2_ref[0]
    out_ref[...] = q[None].astype(out_ref.dtype)              # (1, 1, tile_b)


def critic_forward(state, action, params, *, tile_cap=2048):
    """state: (B, Ds) f32, action: (B, Da) f32 -> (B, 1) f32."""
    B, Ds = state.shape
    Da = action.shape[1]
    state = state.astype(jnp.float32)
    action = action.astype(jnp.float32)

    tile_b, n_tiles = _choose_tiling(B, tile_cap)
    b_pad = tile_b * n_tiles
    if b_pad != B:
        pad = b_pad - B
        state = jnp.pad(state, ((0, pad), (0, 0)))
        action = jnp.pad(action, ((0, pad), (0, 0)))

    flops = 2 * b_pad * (Ds * H1 + Da * H1 + 2 * H1 * H2 + H2)
    bytes_accessed = 4 * (b_pad * (Ds + Da + 1)
                          + H1 * (Ds + Da) + 2 * H1 * H2 + 3 * H1 + H2 + 1)

    out = pl.pallas_call(
        critic_kernel,
        out_shape=jax.ShapeDtypeStruct((n_tiles, 1, tile_b), jnp.float32),
        grid=(n_tiles,),
        in_specs=[
            pl.BlockSpec((tile_b, Ds), lambda i: (i, 0)),   # state tile (pipelined)
            pl.BlockSpec((tile_b, Da), lambda i: (i, 0)),   # action tile (pipelined)
            pl.BlockSpec((H1, Ds), lambda i: (0, 0)),       # Ws (out,in), resident
            pl.BlockSpec((H1, 1), lambda i: (0, 0)),        # bs column
            pl.BlockSpec((H1, Da), lambda i: (0, 0)),       # Wa (out,in), resident
            pl.BlockSpec((H1, 1), lambda i: (0, 0)),        # ba column
            pl.BlockSpec((H2, H1), lambda i: (0, 0)),       # W1 state half (out,in)
            pl.BlockSpec((H2, H1), lambda i: (0, 0)),       # W1 action half (out,in)
            pl.BlockSpec((H2, 1), lambda i: (0, 0)),        # b1 column
            pl.BlockSpec((H2, 1), lambda i: (0, 0)),        # W2 column
            pl.BlockSpec(memory_space=pltpu.SMEM),          # b2 scalar in SMEM
        ],
        out_specs=pl.BlockSpec((1, 1, tile_b), lambda i: (i, 0, 0)),
        compiler_params=pltpu.CompilerParams(
            dimension_semantics=("parallel",),
            vmem_limit_bytes=64 * 1024 * 1024),
        cost_estimate=pl.CostEstimate(
            flops=flops, transcendentals=0, bytes_accessed=bytes_accessed),
    )(state, action,
      params["Ws_t"], params["bs_t"], params["Wa_t"], params["ba_t"],
      params["W1s_t"], params["W1a_t"], params["b1_t"],
      params["W2_t"], params["b2"])

    # Padded rows hold relu(bias)-driven garbage q values -> slice them off.
    return out.reshape(-1)[:B].reshape(B, 1)


def init_params(key, state_dim, action_dim):
    """Deterministic init matching the PyTorch module's __init__ semantics.

    PyTorch Linear weight is (out, in); we keep raw params in (in, out) for the
    plain-JAX reference.
      - first-layer weights: xavier_uniform
      - final weight: U(-0.003, 0.003)
      - all biases: PyTorch default U(-1/sqrt(fan_in), 1/sqrt(fan_in))
    """
    ks = jax.random.split(key, 8)

    def xavier(k, fan_in, fan_out):
        a = math.sqrt(6.0 / (fan_in + fan_out))
        return jax.random.uniform(k, (fan_in, fan_out), jnp.float32, -a, a)

    def bias(k, fan_in, fan_out):
        b = 1.0 / math.sqrt(fan_in)
        return jax.random.uniform(k, (1, fan_out), jnp.float32, -b, b)

    return {
        "Ws": xavier(ks[0], state_dim, H1), "bs": bias(ks[1], state_dim, H1),
        "Wa": xavier(ks[2], action_dim, H1), "ba": bias(ks[3], action_dim, H1),
        "W1": xavier(ks[4], HCAT, H2), "b1": bias(ks[5], HCAT, H2),
        "W2": jax.random.uniform(ks[6], (H2, 1), jnp.float32, -0.003, 0.003),
        "b2": bias(ks[7], H2, 1),
    }


def pack_params(raw):
    """One-time repack into the fused transposed-kernel layout.

    Weights are stored (out, in) — i.e. PyTorch nn.Linear layout — and the
    256-wide joint layer is split into its state / action halves so layer 2
    runs as two accumulating K=128 dots.  Biases become (H, 1) columns that
    broadcast across the lane (batch) axis.
    """
    return {
        "Ws_t": raw["Ws"].T,                       # (H1, Ds)
        "bs_t": raw["bs"].reshape(H1, 1),          # (H1, 1)
        "Wa_t": raw["Wa"].T,                       # (H1, Da)
        "ba_t": raw["ba"].reshape(H1, 1),          # (H1, 1)
        "W1s_t": raw["W1"][:H1, :].T,              # (H2, H1) state half
        "W1a_t": raw["W1"][H1:, :].T,              # (H2, H1) action half
        "b1_t": raw["b1"].reshape(H2, 1),          # (H2, 1)
        "W2_t": raw["W2"],                         # (H2, 1) column
        "b2": raw["b2"].reshape(1),                # (1,) SMEM scalar
    }


def critic_ref(state, action, raw):
    """Plain-JAX reference (mirrors the PyTorch forward exactly)."""
    h_s = jnp.maximum(state @ raw["Ws"] + raw["bs"], 0.0)
    h_a = jnp.maximum(action @ raw["Wa"] + raw["ba"], 0.0)
    both = jnp.concatenate([h_s, h_a], axis=1)
    h = jnp.maximum(both @ raw["W1"] + raw["b1"], 0.0)
    return h @ raw["W2"] + raw["b2"]


if __name__ == "__main__":
    state_dim, action_dim = 32, 8

    key = jax.random.PRNGKey(0)
    k_state, k_action, k_params, k_state2, k_action2 = jax.random.split(key, 5)

    raw = init_params(k_params, state_dim, action_dim)
    params = pack_params(raw)

    # Small single-tile case.
    B = 4
    state = jax.random.normal(k_state, (B, state_dim), jnp.float32)
    action = jax.random.normal(k_action, (B, action_dim), jnp.float32)
    q = jax.block_until_ready(critic_forward(state, action, params))
    q_ref = critic_ref(state, action, raw)
    assert q.shape == (B, 1)
    assert jnp.allclose(q, q_ref, atol=2e-5, rtol=1e-5), \
        float(jnp.max(jnp.abs(q - q_ref)))

    # Multi-tile case: exercises grid >= 2 (megacore path) and batch padding.
    B2 = 20
    state2 = jax.random.normal(k_state2, (B2, state_dim), jnp.float32)
    action2 = jax.random.normal(k_action2, (B2, action_dim), jnp.float32)
    q2 = jax.block_until_ready(critic_forward(state2, action2, params))
    q2_ref = critic_ref(state2, action2, raw)
    assert q2.shape == (B2, 1)
    assert jnp.allclose(q2, q2_ref, atol=2e-5, rtol=1e-5), \
        float(jnp.max(jnp.abs(q2 - q2_ref)))

    print("KERNEL_OK")
</pallas_src>

<mosaic_0001>
module attributes {stable_mosaic.version = 11 : i64} {
  func.func @critic_kernel(%arg0: i32, %arg1: memref<8x32xf32, #tpu.memory_space<vmem>>, %arg2: memref<8x8xf32, #tpu.memory_space<vmem>>, %arg3: memref<128x32xf32, #tpu.memory_space<vmem>>, %arg4: memref<128x1xf32, #tpu.memory_space<vmem>>, %arg5: memref<128x8xf32, #tpu.memory_space<vmem>>, %arg6: memref<128x1xf32, #tpu.memory_space<vmem>>, %arg7: memref<128x128xf32, #tpu.memory_space<vmem>>, %arg8: memref<128x128xf32, #tpu.memory_space<vmem>>, %arg9: memref<128x1xf32, #tpu.memory_space<vmem>>, %arg10: memref<128x1xf32, #tpu.memory_space<vmem>>, %arg11: memref<1xf32, #tpu.memory_space<smem>>, %arg12: memref<1x1x8xf32, #tpu.memory_space<vmem>>) attributes {dimension_semantics = [#tpu.dimension_semantics<parallel>], iteration_bounds = array<i64: 1>, scalar_prefetch = 0 : i64, scratch_operands = 0 : i64, tpu.core_type = #tpu.core_type<tc>, window_params = [{transform_indices = @transform_0, window_bounds = array<i64: 8, 32>}, {transform_indices = @transform_1, window_bounds = array<i64: 8, 8>}, {pipeline_mode = #tpu.pipeline_mode<synchronous>, transform_indices = @transform_2, window_bounds = array<i64: 128, 32>}, {pipeline_mode = #tpu.pipeline_mode<synchronous>, transform_indices = @transform_3, window_bounds = array<i64: 128, 1>}, {pipeline_mode = #tpu.pipeline_mode<synchronous>, transform_indices = @transform_4, window_bounds = array<i64: 128, 8>}, {pipeline_mode = #tpu.pipeline_mode<synchronous>, transform_indices = @transform_5, window_bounds = array<i64: 128, 1>}, {pipeline_mode = #tpu.pipeline_mode<synchronous>, transform_indices = @transform_6, window_bounds = array<i64: 128, 128>}, {pipeline_mode = #tpu.pipeline_mode<synchronous>, transform_indices = @transform_7, window_bounds = array<i64: 128, 128>}, {pipeline_mode = #tpu.pipeline_mode<synchronous>, transform_indices = @transform_8, window_bounds = array<i64: 128, 1>}, {pipeline_mode = #tpu.pipeline_mode<synchronous>, transform_indices = @transform_9, window_bounds = array<i64: 128, 1>}, {transform_indices = @transform_10, window_bounds = array<i64: 1>}, {transform_indices = @transform_11, window_bounds = array<i64: 1, 1, 8>}]} {
    %c0 = arith.constant 0 : index
    %c0_0 = arith.constant 0 : index
    %0 = vector.load %arg3[%c0, %c0_0] : memref<128x32xf32, #tpu.memory_space<vmem>>, vector<128x32xf32>
    %c0_1 = arith.constant 0 : index
    %c0_2 = arith.constant 0 : index
    %1 = vector.load %arg1[%c0_1, %c0_2] : memref<8x32xf32, #tpu.memory_space<vmem>>, vector<8x32xf32>
    %cst = arith.constant dense<0.000000e+00> : vector<128x8xf32>
    %2 = tpu.matmul %0, %1, %cst {dimension_numbers = #tpu.dot_dimension_numbers<[1], [1], [0], [0], [0, 0, 1, 0], [], []>} : vector<128x32xf32>, vector<8x32xf32>, vector<128x8xf32> -> vector<128x8xf32>
    %c0_3 = arith.constant 0 : index
    %c0_4 = arith.constant 0 : index
    %3 = vector.load %arg4[%c0_3, %c0_4] : memref<128x1xf32, #tpu.memory_space<vmem>>, vector<128x1xf32>
    %4 = vector.broadcast %3 : vector<128x1xf32> to vector<128x8xf32>
    %5 = arith.addf %2, %4 : vector<128x8xf32>
    %cst_5 = arith.constant 0.000000e+00 : f32
    %6 = vector.broadcast %cst_5 : f32 to vector<128x8xf32>
    %7 = arith.maximumf %5, %6 : vector<128x8xf32>
    %c0_6 = arith.constant 0 : index
    %c0_7 = arith.constant 0 : index
    %8 = vector.load %arg5[%c0_6, %c0_7] : memref<128x8xf32, #tpu.memory_space<vmem>>, vector<128x8xf32>
    %c0_8 = arith.constant 0 : index
    %c0_9 = arith.constant 0 : index
    %9 = vector.load %arg2[%c0_8, %c0_9] : memref<8x8xf32, #tpu.memory_space<vmem>>, vector<8x8xf32>
    %cst_10 = arith.constant dense<0.000000e+00> : vector<128x8xf32>
    %10 = tpu.matmul %8, %9, %cst_10 {dimension_numbers = #tpu.dot_dimension_numbers<[1], [1], [0], [0], [0, 0, 1, 0], [], []>} : vector<128x8xf32>, vector<8x8xf32>, vector<128x8xf32> -> vector<128x8xf32>
    %c0_11 = arith.constant 0 : index
    %c0_12 = arith.constant 0 : index
    %11 = vector.load %arg6[%c0_11, %c0_12] : memref<128x1xf32, #tpu.memory_space<vmem>>, vector<128x1xf32>
    %12 = vector.broadcast %11 : vector<128x1xf32> to vector<128x8xf32>
    %13 = arith.addf %10, %12 : vector<128x8xf32>
    %cst_13 = arith.constant 0.000000e+00 : f32
    %14 = vector.broadcast %cst_13 : f32 to vector<128x8xf32>
    %15 = arith.maximumf %13, %14 : vector<128x8xf32>
    %c0_14 = arith.constant 0 : index
    %c0_15 = arith.constant 0 : index
    %16 = vector.load %arg7[%c0_14, %c0_15] : memref<128x128xf32, #tpu.memory_space<vmem>>, vector<128x128xf32>
    %cst_16 = arith.constant dense<0.000000e+00> : vector<128x8xf32>
    %17 = tpu.matmul %16, %7, %cst_16 {dimension_numbers = #tpu.dot_dimension_numbers<[1], [0], [0], [1], [0, 0, 1, 1], [], []>} : vector<128x128xf32>, vector<128x8xf32>, vector<128x8xf32> -> vector<128x8xf32>
    %c0_17 = arith.constant 0 : index
    %c0_18 = arith.constant 0 : index
    %18 = vector.load %arg8[%c0_17, %c0_18] : memref<128x128xf32, #tpu.memory_space<vmem>>, vector<128x128xf32>
    %cst_19 = arith.constant dense<0.000000e+00> : vector<128x8xf32>
    %19 = tpu.matmul %18, %15, %cst_19 {dimension_numbers = #tpu.dot_dimension_numbers<[1], [0], [0], [1], [0, 0, 1, 1], [], []>} : vector<128x128xf32>, vector<128x8xf32>, vector<128x8xf32> -> vector<128x8xf32>
    %20 = arith.addf %17, %19 : vector<128x8xf32>
    %c0_20 = arith.constant 0 : index
    %c0_21 = arith.constant 0 : index
    %21 = vector.load %arg9[%c0_20, %c0_21] : memref<128x1xf32, #tpu.memory_space<vmem>>, vector<128x1xf32>
    %22 = vector.broadcast %21 : vector<128x1xf32> to vector<128x8xf32>
    %23 = arith.addf %20, %22 : vector<128x8xf32>
    %cst_22 = arith.constant 0.000000e+00 : f32
    %24 = vector.broadcast %cst_22 : f32 to vector<128x8xf32>
    %25 = arith.maximumf %23, %24 : vector<128x8xf32>
    %c0_23 = arith.constant 0 : index
    %c0_24 = arith.constant 0 : index
    %26 = vector.load %arg10[%c0_23, %c0_24] : memref<128x1xf32, #tpu.memory_space<vmem>>, vector<128x1xf32>
    %27 = vector.broadcast %26 : vector<128x1xf32> to vector<128x8xf32>
    %28 = arith.mulf %25, %27 : vector<128x8xf32>
    %cst_25 = arith.constant dense<0.000000e+00> : vector<8xf32>
    %29 = vector.multi_reduction <add>, %28, %cst_25 [0] : vector<128x8xf32> to vector<8xf32>
    %30 = vector.shape_cast %29 : vector<8xf32> to vector<1x8xf32>
    %c0_26 = arith.constant 0 : index
    %31 = memref.load %arg11[%c0_26] : memref<1xf32, #tpu.memory_space<smem>>
    %32 = vector.broadcast %31 : f32 to vector<1x8xf32>
    %33 = arith.addf %30, %32 : vector<1x8xf32>
    %34 = vector.shape_cast %33 : vector<1x8xf32> to vector<1x1x8xf32>
    %c0_27 = arith.constant 0 : index
    %c0_28 = arith.constant 0 : index
    %c0_29 = arith.constant 0 : index
    %35 = vector.load %arg12[%c0_27, %c0_28, %c0_29] : memref<1x1x8xf32, #tpu.memory_space<vmem>>, vector<1x1x8xf32>
    tpu.vector_store %arg12[%c0_27, %c0_28, %c0_29], %34 {strides = array<i32>} : memref<1x1x8xf32, #tpu.memory_space<vmem>>, vector<1x1x8xf32>,
    return
  }
  func.func @transform_0(%arg0: i32) -> (i32, i32) {
    %c0_i32 = arith.constant 0 : i32
    %c0_i32_0 = arith.constant 0 : i32
    return %arg0, %c0_i32 : i32, i32
  }
  func.func @transform_1(%arg0: i32) -> (i32, i32) {
    %c0_i32 = arith.constant 0 : i32
    %c0_i32_0 = arith.constant 0 : i32
    return %arg0, %c0_i32 : i32, i32
  }
  func.func @transform_2(%arg0: i32) -> (i32, i32) {
    %c0_i32 = arith.constant 0 : i32
    %c0_i32_0 = arith.constant 0 : i32
    %c0_i32_1 = arith.constant 0 : i32
    return %c0_i32, %c0_i32_0 : i32, i32
  }
  func.func @transform_3(%arg0: i32) -> (i32, i32) {
    %c0_i32 = arith.constant 0 : i32
    %c0_i32_0 = arith.constant 0 : i32
    %c0_i32_1 = arith.constant 0 : i32
    return %c0_i32, %c0_i32_0 : i32, i32
  }
  func.func @transform_4(%arg0: i32) -> (i32, i32) {
    %c0_i32 = arith.constant 0 : i32
    %c0_i32_0 = arith.constant 0 : i32
    %c0_i32_1 = arith.constant 0 : i32
    return %c0_i32, %c0_i32_0 : i32, i32
  }
  func.func @transform_5(%arg0: i32) -> (i32, i32) {
    %c0_i32 = arith.constant 0 : i32
    %c0_i32_0 = arith.constant 0 : i32
    %c0_i32_1 = arith.constant 0 : i32
    return %c0_i32, %c0_i32_0 : i32, i32
  }
  func.func @transform_6(%arg0: i32) -> (i32, i32) {
    %c0_i32 = arith.constant 0 : i32
    %c0_i32_0 = arith.constant 0 : i32
    %c0_i32_1 = arith.constant 0 : i32
    return %c0_i32, %c0_i32_0 : i32, i32
  }
  func.func @transform_7(%arg0: i32) -> (i32, i32) {
    %c0_i32 = arith.constant 0 : i32
    %c0_i32_0 = arith.constant 0 : i32
    %c0_i32_1 = arith.constant 0 : i32
    return %c0_i32, %c0_i32_0 : i32, i32
  }
  func.func @transform_8(%arg0: i32) -> (i32, i32) {
    %c0_i32 = arith.constant 0 : i32
    %c0_i32_0 = arith.constant 0 : i32
    %c0_i32_1 = arith.constant 0 : i32
    return %c0_i32, %c0_i32_0 : i32, i32
  }
  func.func @transform_9(%arg0: i32) -> (i32, i32) {
    %c0_i32 = arith.constant 0 : i32
    %c0_i32_0 = arith.constant 0 : i32
    %c0_i32_1 = arith.constant 0 : i32
    return %c0_i32, %c0_i32_0 : i32, i32
  }
  func.func @transform_10(%arg0: i32) -> i32 {
    %c0_i32 = arith.constant 0 : i32
    %c0_i32_0 = arith.constant 0 : i32
    return %c0_i32 : i32
  }
  func.func @transform_11(%arg0: i32) -> (i32, i32, i32) {
    %c0_i32 = arith.constant 0 : i32
    %c0_i32_0 = arith.constant 0 : i32
    %c0_i32_1 = arith.constant 0 : i32
    return %arg0, %c0_i32, %c0_i32_0 : i32, i32, i32
  }
}

</mosaic_0001>

<bundles_post_ra>
// kernel: tpu_custom_call.1
= control target key start
LH: loop header
LB: loop body
LE: loop exit
PB: predicated region body
PF: predicated region fallthrough
CT: control target
= control target key end

     0   :  { %17 = vsyncpa [#allocation4], 0  ;;  %s2456_s0 = inlined_call_operand.hbm [shape: f32[8,32], index: 0, kind: input, shape index: {}]   ;;  %s2457_s1 = inlined_call_operand.hbm [shape: f32[8,8], index: 1, kind: input, shape index: {}]   ;;  %s2458_s2 = inlined_call_operand.hbm [shape: f32[128,32], index: 2, kind: input, shape index: {}]   ;;  %s2459_s3 = inlined_call_operand.hbm [shape: f32[128,1], index: 3, kind: input, shape index: {}]   ;;  %s2460_s4 = inlined_call_operand.hbm [shape: f32[128,8], index: 4, kind: input, shape index: {}]   ;;  %s2461_s5 = inlined_call_operand.hbm [shape: f32[128,1], index: 5, kind: input, shape index: {}]   ;;  %s2462_s6 = inlined_call_operand.hbm [shape: f32[128,128], index: 6, kind: input, shape index: {}]   ;;  %s2463_s7 = inlined_call_operand.hbm [shape: f32[128,128], index: 7, kind: input, shape index: {}]   ;;  %s2464_s8 = inlined_call_operand.hbm [shape: f32[128,1], index: 8, kind: input, shape index: {}]   ;;  %s2465_s9 = inlined_call_operand.hbm [shape: f32[128,1], index: 9, kind: input, shape index: {}]   ;;  %s2466_s10 = inlined_call_operand.<no memory space> [shape: f32[1], index: 10, kind: input, shape index: {}]   ;;  %s2467_s11 = inlined_call_operand.hbm [shape: f32[1,1,8], index: 11, kind: output, shape index: {}]  }
   0x1   :  { %18 = vsyncpa [#allocation7], 0 }
   0x2   :  { %19 = vsyncpa [#allocation10], 0 }
   0x3   :  { %20 = vsyncpa [#allocation13], 0 }
   0x4   :  { %21 = vsyncpa [#allocation16], 0 }
   0x5   :  { %22 = vsyncpa [#allocation19], 0 }
   0x6   :  { %23 = vsyncpa [#allocation5], 0  ;;  %s2096_s17 = smov [#allocation6]   ;;  %s1840_s21 = scalar_lea.hbm %s2457_s1, 128 }
   0x7   :  { %s40_s18 = sshll.u32 %s2096_s17, 4  ;;  %p1841_p0 = scmp.ne.s32.totalorder %s2457_s1, %s1840_s21  ;;  %s41_s18 = int_to_ptr.vmem [resolvable:$true] %s40_s18 }
   0x8   :  { %p1844_p1 = scmp.lt.u32.totalorder %s1840_s21, %s2457_s1 }
   0xa   :  { %p1846_p2 = pnand %p1844_p1, %p1841_p0 }
   0xc   :  { %1849 = shalt.err (!%p1846_p2)
}
   0xd   :  { %s1850_s26 = scalar_lea.vmem %s41_s18, 128  ;;  %p1855_p4 = scmp.lt.s32.totalorder %s41_s18, %s41_s18 }
   0xe   :  { %p1851_p3 = scmp.ne.s32.totalorder %s41_s18, %s1850_s26  ;;  %p1856_p5 = scmp.lt.s32.totalorder %s1850_s26, %s1850_s26 }
  0x10   :  { %p1857_p6 = por %p1856_p5, %p1855_p4 }
  0x12   :  { %p1858_p7 = pnand %p1857_p6, %p1851_p3 }
  0x14   :  { %1861 = shalt.err (!%p1858_p7)
}
  0x15   :  { %43 = dma.hbm_to_vmem [thread:$0]  %s2457_s1, 128, %s41_s18, [#allocation7]  }
  0x16   :  { %s2097_s29 = smov [#allocation9]   ;;  %s2098_s12 = smov [#allocation12]  }
  0x17   :  { %s61_s30 = sshll.u32 %s2097_s29, 4  ;;  %s85_s13 = sshll.u32 %s2098_s12, 4  ;;  %s62_s30 = int_to_ptr.vmem [resolvable:$true] %s61_s30  ;;  %s86_s13 = int_to_ptr.vmem [resolvable:$true] %s85_s13 }
  0x18   :  { %s1862_s16 = scalar_lea.hbm %s2459_s3, 2048 }
  0x19   :  { %p1863_p8 = scmp.ne.s32.totalorder %s2459_s3, %s1862_s16  ;;  %p1866_p9 = scmp.lt.u32.totalorder %s1862_s16, %s2459_s3 }
  0x1b   :  { %p1868_p10 = pnand %p1866_p9, %p1863_p8 }
  0x1d   :  { %1871 = shalt.err (!%p1868_p10)
}
  0x1e   :  { %s1872_s1 = scalar_lea.vmem %s62_s30, 2048  ;;  %p1877_p12 = scmp.lt.s32.totalorder %s62_s30, %s62_s30 }
  0x1f   :  { %p1873_p11 = scmp.ne.s32.totalorder %s62_s30, %s1872_s1  ;;  %p1878_p13 = scmp.lt.s32.totalorder %s1872_s1, %s1872_s1 }
  0x21   :  { %p1879_p0 = por %p1878_p13, %p1877_p12 }
  0x23   :  { %p1880_p1 = pnand %p1879_p0, %p1873_p11 }
  0x25   :  { %1883 = shalt.err (!%p1880_p1)
}
  0x26   :  { %s2099_s18 = smov 128   ;;  %s2100_s22 = smov 8  }
  0x27   :  { %67 = dma.hbm_to_vmem [thread:$0]  %s2459_s3, 2048, %s62_s30, [#allocation10], %s2099_s18, %s2099_s18, %s2100_s22  }
  0x28   :  { %s1884_s27 = scalar_lea.hbm %s2461_s5, 2048 }
  0x29   :  { %p1885_p2 = scmp.ne.s32.totalorder %s2461_s5, %s1884_s27  ;;  %p1888_p3 = scmp.lt.u32.totalorder %s1884_s27, %s2461_s5 }
  0x2b   :  { %p1890_p4 = pnand %p1888_p3, %p1885_p2 }
  0x2d   :  { %1893 = shalt.err (!%p1890_p4)
}
  0x2e   :  { %s1894_s15 = scalar_lea.vmem %s86_s13, 2048  ;;  %p1899_p6 = scmp.lt.s32.totalorder %s86_s13, %s86_s13 }
  0x2f   :  { %p1895_p5 = scmp.ne.s32.totalorder %s86_s13, %s1894_s15  ;;  %p1900_p7 = scmp.lt.s32.totalorder %s1894_s15, %s1894_s15 }
  0x31   :  { %p1901_p8 = por %p1900_p7, %p1899_p6 }
  0x33   :  { %p1902_p9 = pnand %p1901_p8, %p1895_p5 }
  0x35   :  { %1905 = shalt.err (!%p1902_p9)
}
  0x36   :  { %91 = dma.hbm_to_vmem [thread:$0]  %s2461_s5, 2048, %s86_s13, [#allocation13], %s2099_s18, %s2099_s18, %s2100_s22  }
  0x37   :  { %s2101_s16 = smov [#allocation15]   ;;  %s2102_s19 = smov [#allocation3]  }
  0x38   :  { %s109_s17 = sshll.u32 %s2101_s16, 4  ;;  %s30_s20 = sshll.u32 %s2102_s19, 4  ;;  %s110_s17 = int_to_ptr.vmem [resolvable:$true] %s109_s17  ;;  %s31_s20 = int_to_ptr.vmem [resolvable:$true] %s30_s20 }
  0x39   :  { %s1906_s23 = scalar_lea.hbm %s2463_s7, 2048 }
  0x3a   :  { %p1907_p10 = scmp.ne.s32.totalorder %s2463_s7, %s1906_s23  ;;  %p1910_p11 = scmp.lt.u32.totalorder %s1906_s23, %s2463_s7 }
  0x3c   :  { %p1912_p12 = pnand %p1910_p11, %p1907_p10 }
  0x3e   :  { %1915 = shalt.err (!%p1912_p12)
}
  0x3f   :  { %s1916_s5 = scalar_lea.vmem %s110_s17, 2048  ;;  %p1921_p0 = scmp.lt.s32.totalorder %s110_s17, %s110_s17 }
  0x40   :  { %p1917_p13 = scmp.ne.s32.totalorder %s110_s17, %s1916_s5  ;;  %p1922_p1 = scmp.lt.s32.totalorder %s1916_s5, %s1916_s5 }
  0x42   :  { %p1923_p2 = por %p1922_p1, %p1921_p0 }
  0x44   :  { %p1924_p3 = pnand %p1923_p2, %p1917_p13 }
  0x46   :  { %1927 = shalt.err (!%p1924_p3)
}
  0x47   :  { %115 = dma.hbm_to_vmem [thread:$0]  %s2463_s7, 2048, %s110_s17, [#allocation16], %s2099_s18, %s2099_s18, %s2100_s22  }
  0x48   :  { %s1928_s14 = scalar_lea.hbm %s2456_s0, 128 }
  0x49   :  { %p1929_p4 = scmp.ne.s32.totalorder %s2456_s0, %s1928_s14  ;;  %p1932_p5 = scmp.lt.u32.totalorder %s1928_s14, %s2456_s0 }
  0x4b   :  { %p1934_p6 = pnand %p1932_p5, %p1929_p4 }
  0x4d   :  { %1937 = shalt.err (!%p1934_p6)
}
  0x4e   :  { %s1938_s19 = scalar_lea.vmem %s31_s20, 128  ;;  %p1943_p8 = scmp.lt.s32.totalorder %s31_s20, %s31_s20 }
  0x4f   :  { %p1939_p7 = scmp.ne.s32.totalorder %s31_s20, %s1938_s19  ;;  %p1944_p9 = scmp.lt.s32.totalorder %s1938_s19, %s1938_s19 }
  0x51   :  { %p1945_p10 = por %p1944_p9, %p1943_p8 }
  0x53   :  { %p1946_p11 = pnand %p1945_p10, %p1939_p7 }
  0x55   :  { %1949 = shalt.err (!%p1946_p11)
}
  0x56   :  { %33 = dma.hbm_to_vmem [thread:$0]  %s2456_s0, 128, %s31_s20, [#allocation4]  }
  0x57   :  { %s2103_s21 = smov [#allocation8]   ;;  %s2104_s23 = smov [#allocation11]  }
  0x58   :  { %s49_s1 = sshll.u32 %s2103_s21, 4  ;;  %s73_s24 = sshll.u32 %s2104_s23, 4  ;;  %s50_s1 = int_to_ptr.vmem [resolvable:$true] %s49_s1  ;;  %s74_s24 = int_to_ptr.vmem [resolvable:$true] %s73_s24 }
  0x59   :  { %s1950_s27 = scalar_lea.hbm %s2458_s2, 2048 }
  0x5a   :  { %p1951_p12 = scmp.ne.s32.totalorder %s2458_s2, %s1950_s27  ;;  %p1954_p13 = scmp.lt.u32.totalorder %s1950_s27, %s2458_s2 }
  0x5c   :  { %p1956_p0 = pnand %p1954_p13, %p1951_p12 }
  0x5e   :  { %1959 = shalt.err (!%p1956_p0)
}
  0x5f   :  { %s1960_s0 = scalar_lea.vmem %s50_s1, 2048  ;;  %p1965_p2 = scmp.lt.s32.totalorder %s50_s1, %s50_s1 }
  0x60   :  { %p1961_p1 = scmp.ne.s32.totalorder %s50_s1, %s1960_s0  ;;  %p1966_p3 = scmp.lt.s32.totalorder %s1960_s0, %s1960_s0 }
  0x62   :  { %p1967_p4 = por %p1966_p3, %p1965_p2 }
  0x64   :  { %p1968_p5 = pnand %p1967_p4, %p1961_p1 }
  0x66   :  { %1971 = shalt.err (!%p1968_p5)
}
  0x67   :  { %55 = dma.hbm_to_vmem [thread:$0]  %s2458_s2, 2048, %s50_s1, [#allocation7], %s2099_s18, %s2099_s18, %s2100_s22  }
  0x68   :  { %s1972_s3 = scalar_lea.hbm %s2460_s4, 2048 }
  0x69   :  { %p1973_p6 = scmp.ne.s32.totalorder %s2460_s4, %s1972_s3  ;;  %p1976_p7 = scmp.lt.u32.totalorder %s1972_s3, %s2460_s4 }
  0x6b   :  { %p1978_p8 = pnand %p1976_p7, %p1973_p6 }
  0x6d   :  { %1981 = shalt.err (!%p1978_p8)
}
  0x6e   :  { %s1982_s17 = scalar_lea.vmem %s74_s24, 2048  ;;  %p1987_p10 = scmp.lt.s32.totalorder %s74_s24, %s74_s24 }
  0x6f   :  { %p1983_p9 = scmp.ne.s32.totalorder %s74_s24, %s1982_s17  ;;  %p1988_p11 = scmp.lt.s32.totalorder %s1982_s17, %s1982_s17 }
  0x71   :  { %p1989_p12 = por %p1988_p11, %p1987_p10 }
  0x73   :  { %p1990_p13 = pnand %p1989_p12, %p1983_p9 }
  0x75   :  { %1993 = shalt.err (!%p1990_p13)
}
  0x76   :  { %79 = dma.hbm_to_vmem [thread:$0]  %s2460_s4, 2048, %s74_s24, [#allocation10], %s2099_s18, %s2099_s18, %s2100_s22  }
  0x77   :  { %s2105_s1 = smov [#allocation14]   ;;  %s2106_s25 = smov [#allocation17]  }
  0x78   :  { %s97_s23 = sshll.u32 %s2105_s1, 4  ;;  %s121_s26 = sshll.u32 %s2106_s25, 4  ;;  %s98_s23 = int_to_ptr.vmem [resolvable:$true] %s97_s23  ;;  %s122_s26 = int_to_ptr.vmem [resolvable:$true] %s121_s26 }
  0x79   :  { %s1994_s13 = scalar_lea.hbm %s2462_s6, 2048 }
  0x7a   :  { %p1995_p0 = scmp.ne.s32.totalorder %s2462_s6, %s1994_s13  ;;  %p1998_p1 = scmp.lt.u32.totalorder %s1994_s13, %s2462_s6 }
  0x7c   :  { %p2000_p2 = pnand %p1998_p1, %p1995_p0 }
  0x7e   :  { %2003 = shalt.err (!%p2000_p2)
}
  0x7f   :  { %s2004_s4 = scalar_lea.vmem %s98_s23, 2048  ;;  %p2009_p4 = scmp.lt.s32.totalorder %s98_s23, %s98_s23 }
  0x80   :  { %p2005_p3 = scmp.ne.s32.totalorder %s98_s23, %s2004_s4  ;;  %p2010_p5 = scmp.lt.s32.totalorder %s2004_s4, %s2004_s4 }
  0x82   :  { %p2011_p6 = por %p2010_p5, %p2009_p4 }
  0x84   :  { %p2012_p7 = pnand %p2011_p6, %p2005_p3 }
  0x86   :  { %2015 = shalt.err (!%p2012_p7)
}
  0x87   :  { %103 = dma.hbm_to_vmem [thread:$0]  %s2462_s6, 2048, %s98_s23, [#allocation13], %s2099_s18, %s2099_s18, %s2100_s22  }
  0x88   :  { %s2016_s3 = scalar_lea.hbm %s2464_s8, 2048 }
  0x89   :  { %p2017_p8 = scmp.ne.s32.totalorder %s2464_s8, %s2016_s3  ;;  %p2020_p9 = scmp.lt.u32.totalorder %s2016_s3, %s2464_s8 }
  0x8b   :  { %p2022_p10 = pnand %p2020_p9, %p2017_p8 }
  0x8d   :  { %2025 = shalt.err (!%p2022_p10)
}
  0x8e   :  { %s2026_s17 = scalar_lea.vmem %s122_s26, 2048  ;;  %p2031_p12 = scmp.lt.s32.totalorder %s122_s26, %s122_s26 }
  0x8f   :  { %p2027_p11 = scmp.ne.s32.totalorder %s122_s26, %s2026_s17  ;;  %p2032_p13 = scmp.lt.s32.totalorder %s2026_s17, %s2026_s17 }
  0x91   :  { %p2033_p0 = por %p2032_p13, %p2031_p12 }
  0x93   :  { %p2034_p1 = pnand %p2033_p0, %p2027_p11 }
  0x95   :  { %2037 = shalt.err (!%p2034_p1)
}
  0x96   :  { %127 = dma.hbm_to_vmem [thread:$0]  %s2464_s8, 2048, %s122_s26, [#allocation16], %s2099_s18, %s2099_s18, %s2100_s22  }
  0x97   :  { %s2107_s21 = smov [#allocation18]   ;;  %s2038_s27 = scalar_lea.hbm %s2465_s9, 2048 }
  0x98   :  { %s133_s1 = sshll.u32 %s2107_s21, 4  ;;  %p2039_p2 = scmp.ne.s32.totalorder %s2465_s9, %s2038_s27  ;;  %s134_s1 = int_to_ptr.vmem [resolvable:$true] %s133_s1 }
  0x99   :  { %p2042_p3 = scmp.lt.u32.totalorder %s2038_s27, %s2465_s9 }
  0x9b   :  { %p2044_p4 = pnand %p2042_p3, %p2039_p2 }
  0x9d   :  { %2047 = shalt.err (!%p2044_p4)
}
  0x9e   :  { %s2048_s0 = scalar_lea.vmem %s134_s1, 2048  ;;  %p2053_p6 = scmp.lt.s32.totalorder %s134_s1, %s134_s1 }
  0x9f   :  { %p2049_p5 = scmp.ne.s32.totalorder %s134_s1, %s2048_s0  ;;  %p2054_p7 = scmp.lt.s32.totalorder %s2048_s0, %s2048_s0 }
  0xa1   :  { %p2055_p8 = por %p2054_p7, %p2053_p6 }
  0xa3   :  { %p2056_p9 = pnand %p2055_p8, %p2049_p5 }
  0xa5   :  { %2059 = shalt.err (!%p2056_p9)
}
  0xa6   :  { %139 = dma.hbm_to_vmem [thread:$0]  %s2465_s9, 2048, %s134_s1, [#allocation19], %s2099_s18, %s2099_s18, %s2100_s22  }
  0xa7   :  { %2082 = dma.done.wait [#allocation4], 128  }
  0xa8   :  { %2083 = vsyncadd [#allocation4], 4294967168 }
  0xa9   :  { %2084 = dma.done.wait [#allocation7], 2176  }
  0xaa   :  { %2085 = vsyncadd [#allocation7], 4294965120 }
  0xab   :  { %2086 = dma.done.wait [#allocation10], 4096  }
  0xac   :  { %2087 = vsyncadd [#allocation10], 4294963200 }
  0xad   :  { %2088 = dma.done.wait [#allocation13], 4096  }
  0xae   :  { %2089 = vsyncadd [#allocation13], 4294963200 }
  0xaf   :  { %2090 = dma.done.wait [#allocation16], 4096  }
  0xb0   :  { %2091 = vsyncadd [#allocation16], 4294963200 }
  0xb1   :  { %2092 = dma.done.wait [#allocation19], 2048  }
  0xb2   :  { %2093 = vsyncadd [#allocation19], 4294965248  ;;  %v2108_v0 = vmov 0   ;;  %vm611_vm0 = vcmask 64512   ;;  %vm285_vm1 = vcmask 261120   ;;  %v515_v1 = vld [vmem:[#allocation12] sm:$0xff] }
  0xb3   :  { %1839 = vset.pattern.permute.xlu1 %v2108_v0  ;;  %1838 = vset.pattern.permute.xlu0 %v2108_v0  ;;  %v514_v2 = vld [vmem:[#allocation6] sm:$0xff]  ;;  %v189_v3 = vld [vmem:[#allocation9] sm:$0xff]  ;;  %v188_v4 = vld [vmem:[#allocation3] sm:$0xff]  ;;  %s2109_s22 = smov [#allocation20]   ;;  %vm1426_vm2 = vcmask 57344  }
  0xb4   :  { %533 = vperm.xlu1 %1839, %v515_v1   ;;  %1606 = vmatprep.subr.msk.mxu1 %vm611_vm0, %v514_v2  ;;  %v172_v5 = vld [vmem:[#allocation8] sm:$0xff]  ;;  %v516_v7 = vld [vmem:[#allocation12 + $0x8] sm:$0xff]  ;;  %v500_v11 = vld [vmem:[#allocation11 + $0x10] sm:$0xff]  ;;  %s1434_s20 = sshll.u32 %s2109_s22, 4  ;;  %s1435_s20 = int_to_ptr.vmem [resolvable:$true] %s1434_s20 }
  0xb5   :  { %v498_v6 = vld [vmem:[#allocation11] sm:$0xff]  ;;  %207 = vperm.xlu0 %1838, %v189_v3   ;;  %1580 = vmatprep.subr.msk.mxu0 %vm285_vm1, %v188_v4  ;;  %v499_v8 = vld [vmem:[#allocation11 + $0x8] sm:$0xff]  ;;  %v174_v12 = vld [vmem:[#allocation8 + $0x10] sm:$0xff]  ;;  %s2060_s4 = scalar_lea.vmem %s1435_s20, 16  ;;  %s2064_s24 = scalar_lea.vmem %s1435_s20, 32 }
  0xb6   :  { %1581 = vmatpush3.xpose.msk.msra.mxu0 %vm285_vm1, %v188_v4  ;;  %1607 = vmatpush3.xpose.msk.msra.mxu1 %vm611_vm0, %v514_v2  ;;  %v190_v9 = vld [vmem:[#allocation9 + $0x8] sm:$0xff]  ;;  %v192_v13 = vld [vmem:[#allocation9 + $0x18] sm:$0xff]  ;;  %v191_v15 = vld [vmem:[#allocation9 + $0x10] sm:$0xff]  ;;  %p2061_p10 = scmp.ne.s32.totalorder %s1435_s20, %s2060_s4  ;;  %p2065_p11 = scmp.lt.s32.totalorder %s1435_s20, %s1435_s20 }
  0xb7   :  { %1582 = vmatprep.mubr.msk.f32.mxu0 %vm285_vm1, %v172_v5  ;;  %1608 = vmatprep.mubr.msk.f32.mxu1 %vm611_vm0, %v498_v6  ;;  %v173_v10 = vld [vmem:[#allocation8 + $0x8] sm:$0xff]  ;;  %v501_v14 = vld [vmem:[#allocation11 + $0x18] sm:$0xff]  ;;  %v502_v17 = vld [vmem:[#allocation11 + $0x20] sm:$0xff]  ;;  %p2066_p12 = scmp.lt.s32.totalorder %s2064_s24, %s2060_s4 }
  0xb8   :  { %538 = vperm.xlu1 %1839, %v516_v7   ;;  %v175_v16 = vld [vmem:[#allocation8 + $0x18] sm:$0xff]  ;;  %v176_v18 = vld [vmem:[#allocation8 + $0x20] sm:$0xff]  ;;  %v503_v20 = vld [vmem:[#allocation11 + $0x28] sm:$0xff] }
  0xb9   :  { %1609 = vmatmul.mubr.msk.f32.vlgmr.msra.gmra.mrb[0].mxu1 %vm611_vm0, %v499_v8  ;;  %212 = vperm.xlu0 %1838, %v190_v9   ;;  %v518_v19 = vld [vmem:[#allocation12 + $0x18] sm:$0xff]  ;;  %v517_v21 = vld [vmem:[#allocation12 + $0x10] sm:$0xff]  ;;  %v177_v22 = vld [vmem:[#allocation8 + $0x28] sm:$0xff]  ;;  %p2067_p13 = por %p2066_p12, %p2065_p11 }
  0xba   :  { %1583 = vmatmul.mubr.msk.f32.vlgmr.msra.gmra.mrb[0].mxu0 %vm285_vm1, %v173_v10  ;;  %1611 = vmatprep.mubr.msk.f32.mxu1 %vm611_vm0, %v500_v11  ;;  %v504_v23 = vld [vmem:[#allocation11 + $0x30] sm:$0xff]  ;;  %v194_v25 = vld [vmem:[#allocation9 + $0x28] sm:$0xff]  ;;  %v505_v26 = vld [vmem:[#allocation11 + $0x38] sm:$0xff] }
  0xbb   :  { %1585 = vmatprep.mubr.msk.f32.mxu0 %vm285_vm1, %v174_v12  ;;  %v178_v24 = vld [vmem:[#allocation8 + $0x30] sm:$0xff]  ;;  %v193_v27 = vld [vmem:[#allocation9 + $0x20] sm:$0xff]  ;;  %v179_v28 = vld [vmem:[#allocation8 + $0x38] sm:$0xff]  ;;  %p2068_p0 = pnand %p2067_p13, %p2061_p10 }
  0xbc   :  { %222 = vperm.xlu1 %1839, %v192_v13   ;;  %v506_v29 = vld [vmem:[#allocation11 + $0x40] sm:$0xff]  ;;  %v520_v31 = vld [vmem:[#allocation12 + $0x28] sm:$0xff]  ;;  %v508_v35 = vld [vmem:[#allocation11 + $0x50] sm:$0xff] }
  0xbd   :  { %1612 = vmatmul.mubr.msk.f32.gmra.mrb[2].mxu1 %vm611_vm0, %v501_v14  ;;  %217 = vperm.xlu0 %1838, %v191_v15   ;;  %v180_v30 = vld [vmem:[#allocation8 + $0x40] sm:$0xff]  ;;  %v507_v32 = vld [vmem:[#allocation11 + $0x48] sm:$0xff]  ;;  %v182_v36 = vld [vmem:[#allocation8 + $0x50] sm:$0xff] }
  0xbe   :  { %1586 = vmatmul.mubr.msk.f32.gmra.mrb[2].mxu0 %vm285_vm1, %v175_v16  ;;  %1614 = vmatprep.mubr.msk.f32.mxu1 %vm611_vm0, %v502_v17  ;;  %v519_v33 = vld [vmem:[#allocation12 + $0x20] sm:$0xff]  ;;  %v181_v34 = vld [vmem:[#allocation8 + $0x48] sm:$0xff]  ;;  %v196_v37 = vld [vmem:[#allocation9 + $0x38] sm:$0xff] }
  0xbf   :  { %1588 = vmatprep.mubr.msk.f32.mxu0 %vm285_vm1, %v176_v18  ;;  %v509_v38 = vld [vmem:[#allocation11 + $0x58] sm:$0xff]  ;;  %v195_v39 = vld [vmem:[#allocation9 + $0x30] sm:$0xff]  ;;  %v510_v41 = vld [vmem:[#allocation11 + $0x60] sm:$0xff] }
  0xc0   :  { %548 = vperm.xlu1 %1839, %v518_v19   ;;  %v183_v40 = vld [vmem:[#allocation8 + $0x58] sm:$0xff]  ;;  %v184_v42 = vld [vmem:[#allocation8 + $0x60] sm:$0xff]  ;;  %v511_v44 = vld [vmem:[#allocation11 + $0x68] sm:$0xff] }
  0xc1   :  { %1615 = vmatmul.mubr.msk.f32.gmra.mrb[4].mxu1 %vm611_vm0, %v503_v20  ;;  %543 = vperm.xlu0 %1838, %v517_v21   ;;  %v522_v43 = vld [vmem:[#allocation12 + $0x38] sm:$0xff]  ;;  %v521_v45 = vld [vmem:[#allocation12 + $0x30] sm:$0xff]  ;;  %v185_v46 = vld [vmem:[#allocation8 + $0x68] sm:$0xff] }
  0xc2   :  { %1589 = vmatmul.mubr.msk.f32.gmra.mrb[4].mxu0 %vm285_vm1, %v177_v22  ;;  %1617 = vmatprep.mubr.msk.f32.mxu1 %vm611_vm0, %v504_v23  ;;  %v512_v47 = vld [vmem:[#allocation11 + $0x70] sm:$0xff]  ;;  %v198_v49 = vld [vmem:[#allocation9 + $0x48] sm:$0xff]  ;;  %v513_v50 = vld [vmem:[#allocation11 + $0x78] sm:$0xff] }
  0xc3   :  { %1591 = vmatprep.mubr.msk.f32.mxu0 %vm285_vm1, %v178_v24  ;;  %v186_v48 = vld [vmem:[#allocation8 + $0x70] sm:$0xff]  ;;  %v197_v51 = vld [vmem:[#allocation9 + $0x40] sm:$0xff]  ;;  %v187_v52 = vld [vmem:[#allocation8 + $0x78] sm:$0xff] }
  0xc4   :  { %232 = vperm.xlu1 %1839, %v194_v25   ;;  %v524_v53 = vld [vmem:[#allocation12 + $0x48] sm:$0xff]  ;;  %v523_v54 = vld [vmem:[#allocation12 + $0x40] sm:$0xff]  ;;  %v200_v55 = vld [vmem:[#allocation9 + $0x58] sm:$0xff] }
  0xc5   :  { %1618 = vmatmul.mubr.msk.f32.gmra.mrb[6].mxu1 %vm611_vm0, %v505_v26  ;;  %227 = vperm.xlu0 %1838, %v193_v27   ;;  %v199_v56 = vld [vmem:[#allocation9 + $0x50] sm:$0xff]  ;;  %v526_v57 = vld [vmem:[#allocation12 + $0x58] sm:$0xff]  ;;  %v202_v59 = vld [vmem:[#allocation9 + $0x68] sm:$0xff] }
  0xc6   :  { %1592 = vmatmul.mubr.msk.f32.gmra.mrb[6].mxu0 %vm285_vm1, %v179_v28  ;;  %1620 = vmatprep.mubr.msk.f32.mxu1 %vm611_vm0, %v506_v29  ;;  %v525_v58 = vld [vmem:[#allocation12 + $0x50] sm:$0xff]  ;;  %v201_v60 = vld [vmem:[#allocation9 + $0x60] sm:$0xff]  ;;  %v528_v61 = vld [vmem:[#allocation12 + $0x68] sm:$0xff] }
  0xc7   :  { %1594 = vmatprep.mubr.msk.f32.mxu0 %vm285_vm1, %v180_v30  ;;  %v527_v62 = vld [vmem:[#allocation12 + $0x60] sm:$0xff]  ;;  %v204_v63 = vld [vmem:[#allocation9 + $0x78] sm:$0xff]  ;;  %v203_v0 = vld [vmem:[#allocation9 + $0x70] sm:$0xff] }
  0xc8   :  { %558 = vperm.xlu1 %1839, %v520_v31   ;;  %v530_v1 = vld [vmem:[#allocation12 + $0x78] sm:$0xff]  ;;  %v529_v2 = vld [vmem:[#allocation12 + $0x70] sm:$0xff]  ;;  %v1147_v3 = vld [vmem:[#allocation17 + $0x8] sm:$0xff] }
  0xc9   :  { %1621 = vmatmul.mubr.msk.f32.gmra.mrb[8].mxu1 %vm611_vm0, %v507_v32  ;;  %553 = vperm.xlu0 %1838, %v519_v33   ;;  %v1146_v4 = vld [vmem:[#allocation17] sm:$0xff]  ;;  %v1149_v5 = vld [vmem:[#allocation17 + $0x18] sm:$0xff]  ;;  %v1148_v6 = vld [vmem:[#allocation17 + $0x10] sm:$0xff] }
  0xca   :  { %1595 = vmatmul.mubr.msk.f32.gmra.mrb[8].mxu0 %vm285_vm1, %v181_v34  ;;  %1623 = vmatprep.mubr.msk.f32.mxu1 %vm611_vm0, %v508_v35  ;;  %v1275_v7 = vld [vmem:[#allocation18 + $0x8] sm:$0xff]  ;;  %v1274_v8 = vld [vmem:[#allocation18] sm:$0xff]  ;;  %v1276_v9 = vld [vmem:[#allocation18 + $0x10] sm:$0xff] }
  0xcb   :  { %1597 = vmatprep.mubr.msk.f32.mxu0 %vm285_vm1, %v182_v36  ;;  %v1150_v10 = vld [vmem:[#allocation17 + $0x20] sm:$0xff]  ;;  %v1277_v11 = vld [vmem:[#allocation18 + $0x18] sm:$0xff]  ;;  %v1151_v12 = vld [vmem:[#allocation17 + $0x28] sm:$0xff] }
  0xcc   :  { %242 = vperm.xlu1 %1839, %v196_v37   ;;  %v1278_v13 = vld [vmem:[#allocation18 + $0x20] sm:$0xff]  ;;  %v1152_v14 = vld [vmem:[#allocation17 + $0x30] sm:$0xff]  ;;  %v1279_v15 = vld [vmem:[#allocation18 + $0x28] sm:$0xff] }
  0xcd   :  { %1624 = vmatmul.mubr.msk.f32.gmra.mrb[10].mxu1 %vm611_vm0, %v509_v38  ;;  %237 = vperm.xlu0 %1838, %v195_v39   ;;  %v1153_v16 = vld [vmem:[#allocation17 + $0x38] sm:$0xff]  ;;  %v1280_v17 = vld [vmem:[#allocation18 + $0x30] sm:$0xff]  ;;  %v1154_v18 = vld [vmem:[#allocation17 + $0x40] sm:$0xff] }
  0xce   :  { %1598 = vmatmul.mubr.msk.f32.gmra.mrb[10].mxu0 %vm285_vm1, %v183_v40  ;;  %1626 = vmatprep.mubr.msk.f32.mxu1 %vm611_vm0, %v510_v41  ;;  %v1281_v19 = vld [vmem:[#allocation18 + $0x38] sm:$0xff]  ;;  %v1155_v20 = vld [vmem:[#allocation17 + $0x48] sm:$0xff]  ;;  %v1282_v21 = vld [vmem:[#allocation18 + $0x40] sm:$0xff] }
  0xcf   :  { %1600 = vmatprep.mubr.msk.f32.mxu0 %vm285_vm1, %v184_v42  ;;  %v1156_v22 = vld [vmem:[#allocation17 + $0x50] sm:$0xff]  ;;  %v1283_v23 = vld [vmem:[#allocation18 + $0x48] sm:$0xff]  ;;  %v1157_v24 = vld [vmem:[#allocation17 + $0x58] sm:$0xff] }
  0xd0   :  { %568 = vperm.xlu1 %1839, %v522_v43   ;;  %v1284_v25 = vld [vmem:[#allocation18 + $0x50] sm:$0xff]  ;;  %v1158_v26 = vld [vmem:[#allocation17 + $0x60] sm:$0xff]  ;;  %v1285_v27 = vld [vmem:[#allocation18 + $0x58] sm:$0xff] }
  0xd1   :  { %1627 = vmatmul.mubr.msk.f32.gmra.mrb[12].mxu1 %vm611_vm0, %v511_v44  ;;  %563 = vperm.xlu0 %1838, %v521_v45   ;;  %v1159_v28 = vld [vmem:[#allocation17 + $0x68] sm:$0xff]  ;;  %v1286_v29 = vld [vmem:[#allocation18 + $0x60] sm:$0xff]  ;;  %v1160_v30 = vld [vmem:[#allocation17 + $0x70] sm:$0xff] }
  0xd2   :  { %1601 = vmatmul.mubr.msk.f32.gmra.mrb[12].mxu0 %vm285_vm1, %v185_v46  ;;  %1629 = vmatprep.mubr.msk.f32.mxu1 %vm611_vm0, %v512_v47  ;;  %v1287_v31 = vld [vmem:[#allocation18 + $0x68] sm:$0xff]  ;;  %v1161_v32 = vld [vmem:[#allocation17 + $0x78] sm:$0xff]  ;;  %v1288_v34 = vld [vmem:[#allocation18 + $0x70] sm:$0xff] }
  0xd3   :  { %1603 = vmatprep.mubr.msk.f32.mxu0 %vm285_vm1, %v186_v48  ;;  %v1289_v33 = vld [vmem:[#allocation18 + $0x78] sm:$0xff]  ;;  %v840_v35 = vld [vmem:[#allocation15] sm:$0xff] }
  0xd4   :  { %252 = vperm.xlu1 %1839, %v198_v49   ;;  %v824_v36 = vld [vmem:[#allocation14] sm:$0xff] }
  0xd5   :  { %1630 = vmatmul.mubr.msk.f32.gmra.mrb[14].mxu1 %vm611_vm0, %v513_v50  ;;  %247 = vperm.xlu0 %1838, %v197_v51  }
  0xd6   :  { %1604 = vmatmul.mubr.msk.f32.gmra.mrb[14].mxu0 %vm285_vm1, %v187_v52  ;;  %1664 = vmatprep.mubr.f32.mxu1 %v840_v35 }
  0xd7   :  { %1720 = vmatprep.mubr.f32.mxu0 %v824_v36 }
  0xd8   :  { %578 = vperm.xlu1 %1839, %v524_v53  }
  0xd9   :  { %573 = vperm.xlu0 %1838, %v523_v54  }
  0xdc   :  { %262 = vperm.xlu1 %1839, %v200_v55  }
  0xdd   :  { %257 = vperm.xlu0 %1838, %v199_v56  }
  0xe0   :  { %588 = vperm.xlu1 %1839, %v526_v57  }
  0xe1   :  { %583 = vperm.xlu0 %1838, %v525_v58  }
  0xe4   :  { %272 = vperm.xlu1 %1839, %v202_v59  }
  0xe5   :  { %267 = vperm.xlu0 %1838, %v201_v60  }
  0xe8   :  { %598 = vperm.xlu1 %1839, %v528_v61  }
  0xe9   :  { %593 = vperm.xlu0 %1838, %v527_v62  }
  0xec   :  { %282 = vperm.xlu1 %1839, %v204_v63  }
  0xed   :  { %277 = vperm.xlu0 %1838, %v203_v0  }
  0xf0   :  { %608 = vperm.xlu1 %1839, %v530_v1  }
  0xf1   :  { %603 = vperm.xlu0 %1838, %v529_v2  }
  0xf4   :  { %1169 = vperm.xlu1 %1839, %v1147_v3  }
  0xf5   :  { %1164 = vperm.xlu0 %1838, %v1146_v4  }
  0xf8   :  { %1179 = vperm.xlu1 %1839, %v1149_v5  }
  0xf9   :  { %1174 = vperm.xlu0 %1838, %v1148_v6  }
  0xfc   :  { %1297 = vperm.xlu1 %1839, %v1275_v7  }
  0xfd   :  { %1292 = vperm.xlu0 %1838, %v1274_v8  }
 0x100   :  { %1302 = vperm.xlu1 %1839, %v1276_v9  }
 0x101   :  { %1184 = vperm.xlu0 %1838, %v1150_v10  }
 0x104   :  { %1307 = vperm.xlu1 %1839, %v1277_v11  }
 0x105   :  { %1189 = vperm.xlu0 %1838, %v1151_v12  }
 0x108   :  { %1312 = vperm.xlu1 %1839, %v1278_v13  }
 0x109   :  { %1194 = vperm.xlu0 %1838, %v1152_v14  }
 0x10c   :  { %1317 = vperm.xlu1 %1839, %v1279_v15  }
 0x10d   :  { %1199 = vperm.xlu0 %1838, %v1153_v16  }
 0x110   :  { %1322 = vperm.xlu1 %1839, %v1280_v17  }
 0x111   :  { %1204 = vperm.xlu0 %1838, %v1154_v18  }
 0x114   :  { %1327 = vperm.xlu1 %1839, %v1281_v19  }
 0x115   :  { %1209 = vperm.xlu0 %1838, %v1155_v20  }
 0x118   :  { %1332 = vperm.xlu1 %1839, %v1282_v21  }
 0x119   :  { %1214 = vperm.xlu0 %1838, %v1156_v22  }
 0x11c   :  { %1337 = vperm.xlu1 %1839, %v1283_v23  }
 0x11d   :  { %1219 = vperm.xlu0 %1838, %v1157_v24  }
 0x120   :  { %1342 = vperm.xlu1 %1839, %v1284_v25  }
 0x121   :  { %1224 = vperm.xlu0 %1838, %v1158_v26  }
 0x124   :  { %1347 = vperm.xlu1 %1839, %v1285_v27  }
 0x125   :  { %1229 = vperm.xlu0 %1838, %v1159_v28  }
 0x128   :  { %1352 = vperm.xlu1 %1839, %v1286_v29  }
 0x129   :  { %1234 = vperm.xlu0 %1838, %v1160_v30  }
 0x12c   :  { %1357 = vperm.xlu1 %1839, %v1287_v31  }
 0x12d   :  { %1239 = vperm.xlu0 %1838, %v1161_v32  }
 0x130   :  { %1367 = vperm.xlu1 %1839, %v1289_v33  }
 0x131   :  { %1362 = vperm.xlu0 %1838, %v1288_v34  }
 0x133   :  { %v534_v37 = vpop.permute.xlu1 %533 }
 0x134   :  { %v208_v38 = vpop.permute.xlu0 %207 }
 0x137   :  { %v539_v39 = vpop.permute.xlu1 %538 }
 0x138   :  { %v213_v40 = vpop.permute.xlu0 %212 }
 0x13b   :  { %v223_v41 = vpop.permute.xlu1 %222 }
 0x13c   :  { %v218_v42 = vpop.permute.xlu0 %217 }
 0x13f   :  { %v549_v43 = vpop.permute.xlu1 %548 }
 0x140   :  { %v544_v44 = vpop.permute.xlu0 %543 }
 0x143   :  { %v233_v45 = vpop.permute.xlu1 %232 }
 0x144   :  { %v228_v46 = vpop.permute.xlu0 %227 }
 0x147   :  { %v559_v47 = vpop.permute.xlu1 %558 }
 0x148   :  { %v554_v48 = vpop.permute.xlu0 %553 }
 0x14b   :  { %v2350_v49 = vpop.permute.xlu1 %242 }
 0x14c   :  { %v2352_v50 = vpop.permute.xlu0 %237 }
 0x14f   :  { %v569_v51 = vpop.permute.xlu1 %568 }
 0x150   :  { %v2354_v52 = vpop.permute.xlu0 %563 }
 0x153   :  { %v2356_v53 = vpop.permute.xlu1 %252 }
 0x154   :  { %v2358_v54 = vpop.permute.xlu0 %247 }
 0x157   :  { %v2360_v55 = vpop.permute.xlu1 %578 }
 0x158   :  { %v2362_v56 = vpop.permute.xlu0 %573 }
 0x15b   :  { %v2364_v57 = vpop.permute.xlu1 %262 }
 0x15c   :  { %v2366_v58 = vpop.permute.xlu0 %257 }
 0x15f   :  { %v2368_v63 = vpop.permute.xlu1 %588 }
 0x160   :  { %v2370_v5 = vpop.permute.xlu0 %583 }
 0x163   :  { %v2372_v20 = vpop.permute.xlu1 %272 }
 0x164   :  { %v2374_v28 = vpop.permute.xlu0 %267 }
 0x18c   :  { %v1610_v59 = vpop.f32.mrb[0].mxu1 }
 0x18d   :  { %v735_v60 = vadd.f32 %v1610_v59, %v539_v39  ;;  %v1584_v61 = vpop.f32.mrb[0].mxu0  ;;  %v729_v62 = vpop.f32.mrb[1].mxu1 }
 0x18e   :  { %v409_v0 = vadd.f32 %v1584_v61, %v213_v40  ;;  %v403_v1 = vpop.f32.mrb[1].mxu0  ;;  %v730_v2 = vadd.f32 %v729_v62, %v534_v37  ;;  %v594_v61 = vpop.permute.xlu0 %593 }
 0x18f   :  { %v809_v3 = vmax.f32 %v735_v60, 0.0  ;;  %v404_v4 = vadd.f32 %v403_v1, %v208_v38 }
 0x190   :  { %v483_v6 = vmax.f32 %v409_v0, 0.0  ;;  %v808_v7 = vmax.f32 %v730_v2, 0.0  ;;  %v1613_v8 = vpop.f32.mrb[2].mxu1 }
 0x191   :  { %v482_v9 = vmax.f32 %v404_v4, 0.0  ;;  %v745_v10 = vadd.f32 %v1613_v8, %v549_v43  ;;  %v1587_v11 = vpop.f32.mrb[2].mxu0  ;;  %v739_v12 = vpop.f32.mrb[3].mxu1 }
 0x192   :  { %v1744_v13 = vpack.c.bf16 %v809_v3, %v808_v7  ;;  %v419_v14 = vadd.f32 %v1587_v11, %v223_v41  ;;  %v413_v15 = vpop.f32.mrb[3].mxu0  ;;  %v740_v16 = vadd.f32 %v739_v12, %v544_v44  ;;  %v599_v43 = vpop.permute.xlu1 %598 }
 0x193   :  { %v1776_v17 = vpack.c.bf16 %v483_v6, %v482_v9  ;;  %v811_v18 = vmax.f32 %v745_v10, 0.0  ;;  %v414_v19 = vadd.f32 %v413_v15, %v218_v42 }
 0x194   :  { %v485_v21 = vmax.f32 %v419_v14, 0.0  ;;  %v810_v22 = vmax.f32 %v740_v16, 0.0  ;;  %v1616_v23 = vpop.f32.mrb[4].mxu1  ;;  %1745 = vmatprep.subr.bf16.mxu1 %v1744_v13 }
 0x195   :  { %v484_v24 = vmax.f32 %v414_v19, 0.0  ;;  %v755_v25 = vadd.f32 %v1616_v23, %v559_v47  ;;  %v1590_v26 = vpop.f32.mrb[4].mxu0  ;;  %1777 = vmatprep.subr.bf16.mxu0 %v1776_v17  ;;  %v749_v27 = vpop.f32.mrb[5].mxu1  ;;  %1747 = vmatpush3.bf16.msra.mxu1 %v1744_v13 }
 0x196   :  { %v1748_v29 = vpack.c.bf16 %v811_v18, %v810_v22  ;;  %v429_v30 = vadd.f32 %v1590_v26, %v233_v45  ;;  %v423_v31 = vpop.f32.mrb[5].mxu0  ;;  %v750_v32 = vadd.f32 %v749_v27, %v554_v48  ;;  %1779 = vmatpush3.bf16.msra.mxu0 %v1776_v17  ;;  %v283_v10 = vpop.permute.xlu1 %282 }
 0x197   :  { %v1780_v33 = vpack.c.bf16 %v485_v21, %v484_v24  ;;  %v813_v34 = vmax.f32 %v755_v25, 0.0  ;;  %v424_v35 = vadd.f32 %v423_v31, %v228_v46 }
 0x198   :  { %v487_v36 = vmax.f32 %v429_v30, 0.0  ;;  %v812_v37 = vmax.f32 %v750_v32, 0.0  ;;  %v1619_v38 = vpop.f32.mrb[6].mxu1  ;;  %1749 = vmatprep.subr.bf16.mxu1 %v1748_v29 }
 0x199   :  { %v486_v39 = vmax.f32 %v424_v35, 0.0  ;;  %v765_v40 = vadd.f32 %v1619_v38, %v569_v51  ;;  %v1593_v41 = vpop.f32.mrb[6].mxu0  ;;  %1781 = vmatprep.subr.bf16.mxu0 %v1780_v33  ;;  %v759_v42 = vpop.f32.mrb[7].mxu1  ;;  %1751 = vmatpush3.bf16.msra.mxu1 %v1748_v29 }
 0x19a   :  { %v1752_v44 = vpack.c.bf16 %v813_v34, %v812_v37  ;;  %v439_v45 = vadd.f32 %v1593_v41, %v2350_v49  ;;  %v433_v47 = vpop.f32.mrb[7].mxu0  ;;  %v760_v48 = vadd.f32 %v759_v42, %v2354_v52  ;;  %1783 = vmatpush3.bf16.msra.mxu0 %v1780_v33  ;;  %v609_v32 = vpop.permute.xlu1 %608 }
 0x19b   :  { %v1784_v59 = vpack.c.bf16 %v487_v36, %v486_v39  ;;  %v815_v46 = vmax.f32 %v765_v40, 0.0  ;;  %v434_v60 = vadd.f32 %v433_v47, %v2352_v50 }
 0x19c   :  { %v489_v62 = vmax.f32 %v439_v45, 0.0  ;;  %v814_v0 = vmax.f32 %v760_v48, 0.0  ;;  %v1622_v51 = vpop.f32.mrb[8].mxu1  ;;  %1753 = vmatprep.subr.bf16.mxu1 %v1752_v44 }
 0x19d   :  { %v488_v1 = vmax.f32 %v434_v60, 0.0  ;;  %v775_v2 = vadd.f32 %v1622_v51, %v2360_v55  ;;  %v1596_v3 = vpop.f32.mrb[8].mxu0  ;;  %1785 = vmatprep.subr.bf16.mxu0 %v1784_v59  ;;  %v769_v4 = vpop.f32.mrb[9].mxu1  ;;  %1755 = vmatpush3.bf16.msra.mxu1 %v1752_v44  ;;  %v825_v51 = vld [vmem:[#allocation14 + $0x8] sm:$0xff] }
 0x19e   :  { %v1756_v49 = vpack.c.bf16 %v815_v46, %v814_v0  ;;  %v449_v52 = vadd.f32 %v1596_v3, %v2356_v53  ;;  %v443_v6 = vpop.f32.mrb[9].mxu0  ;;  %v770_v7 = vadd.f32 %v769_v4, %v2362_v56  ;;  %1787 = vmatpush3.bf16.msra.mxu0 %v1784_v59  ;;  %v278_v53 = vpop.permute.xlu0 %277  ;;  %v841_v0 = vld [vmem:[#allocation15 + $0x8] sm:$0xff]  ;;  %v843_v3 = vld [vmem:[#allocation15 + $0x18] sm:$0xff] }
 0x19f   :  { %v1788_v50 = vpack.c.bf16 %v489_v62, %v488_v1  ;;  %v817_v8 = vmax.f32 %v775_v2, 0.0  ;;  %v444_v9 = vadd.f32 %v443_v6, %v2358_v54  ;;  %v842_v1 = vld [vmem:[#allocation15 + $0x10] sm:$0xff]  ;;  %v827_v4 = vld [vmem:[#allocation14 + $0x18] sm:$0xff]  ;;  %v845_v6 = vld [vmem:[#allocation15 + $0x28] sm:$0xff] }
 0x1a0   :  { %v491_v11 = vmax.f32 %v449_v52, 0.0  ;;  %v816_v12 = vmax.f32 %v770_v7, 0.0  ;;  %v1625_v13 = vpop.f32.mrb[10].mxu1  ;;  %1757 = vmatprep.subr.bf16.mxu1 %v1756_v49  ;;  %v826_v2 = vld [vmem:[#allocation14 + $0x10] sm:$0xff]  ;;  %v828_v52 = vld [vmem:[#allocation14 + $0x20] sm:$0xff]  ;;  %v829_v7 = vld [vmem:[#allocation14 + $0x28] sm:$0xff] }
 0x1a1   :  { %v490_v55 = vmax.f32 %v444_v9, 0.0  ;;  %v785_v14 = vadd.f32 %v1625_v13, %v2368_v63  ;;  %v1599_v15 = vpop.f32.mrb[10].mxu0  ;;  %1789 = vmatprep.subr.bf16.mxu0 %v1788_v50  ;;  %v779_v16 = vpop.f32.mrb[11].mxu1  ;;  %1759 = vmatpush3.bf16.msra.mxu1 %v1756_v49  ;;  %v844_v49 = vld [vmem:[#allocation15 + $0x20] sm:$0xff]  ;;  %v847_v9 = vld [vmem:[#allocation15 + $0x38] sm:$0xff]  ;;  %v849_v13 = vld [vmem:[#allocation15 + $0x48] sm:$0xff] }
 0x1a2   :  { %v1760_v17 = vpack.c.bf16 %v817_v8, %v816_v12  ;;  %v459_v56 = vadd.f32 %v1599_v15, %v2364_v57  ;;  %v453_v18 = vpop.f32.mrb[11].mxu0  ;;  %v780_v19 = vadd.f32 %v779_v16, %v2370_v5  ;;  %1791 = vmatpush3.bf16.msra.mxu0 %v1788_v50  ;;  %v604_v35 = vpop.permute.xlu0 %603  ;;  %v846_v50 = vld [vmem:[#allocation15 + $0x30] sm:$0xff]  ;;  %v832_v12 = vld [vmem:[#allocation14 + $0x40] sm:$0xff]  ;;  %v851_v16 = vld [vmem:[#allocation15 + $0x58] sm:$0xff] }
 0x1a3   :  { %v1792_v54 = vpack.c.bf16 %v491_v11, %v490_v55  ;;  %v819_v21 = vmax.f32 %v785_v14, 0.0  ;;  %v454_v22 = vadd.f32 %v453_v18, %v2366_v58  ;;  %v830_v8 = vld [vmem:[#allocation14 + $0x30] sm:$0xff]  ;;  %v848_v11 = vld [vmem:[#allocation15 + $0x40] sm:$0xff]  ;;  %v833_v55 = vld [vmem:[#allocation14 + $0x48] sm:$0xff] }
 0x1a4   :  { %v493_v23 = vmax.f32 %v459_v56, 0.0  ;;  %v818_v24 = vmax.f32 %v780_v19, 0.0  ;;  %v1628_v25 = vpop.f32.mrb[12].mxu1  ;;  %1761 = vmatprep.subr.bf16.mxu1 %v1760_v17  ;;  %v850_v14 = vld [vmem:[#allocation15 + $0x50] sm:$0xff]  ;;  %v836_v56 = vld [vmem:[#allocation14 + $0x60] sm:$0xff]  ;;  %v853_v18 = vld [vmem:[#allocation15 + $0x68] sm:$0xff] }
 0x1a5   :  { %v492_v63 = vmax.f32 %v454_v22, 0.0  ;;  %v795_v26 = vadd.f32 %v1628_v25, %v599_v43  ;;  %v1602_v27 = vpop.f32.mrb[12].mxu0  ;;  %1793 = vmatprep.subr.bf16.mxu0 %v1792_v54  ;;  %v789_v29 = vpop.f32.mrb[13].mxu1  ;;  %1763 = vmatpush3.bf16.msra.mxu1 %v1760_v17  ;;  %v834_v15 = vld [vmem:[#allocation14 + $0x50] sm:$0xff]  ;;  %v852_v17 = vld [vmem:[#allocation15 + $0x60] sm:$0xff]  ;;  %v837_v19 = vld [vmem:[#allocation14 + $0x68] sm:$0xff] }
 0x1a6   :  { %v1764_v30 = vpack.c.bf16 %v819_v21, %v818_v24  ;;  %v469_v57 = vadd.f32 %v1602_v27, %v2372_v20  ;;  %v463_v31 = vpop.f32.mrb[13].mxu0  ;;  %v790_v5 = vadd.f32 %v789_v29, %v594_v61  ;;  %1795 = vmatpush3.bf16.msra.mxu0 %v1792_v54  ;;  %v854_v54 = vld [vmem:[#allocation15 + $0x70] sm:$0xff]  ;;  %v855_v22 = vld [vmem:[#allocation15 + $0x78] sm:$0xff]  ;;  %v1170_v24 = vpop.permute.xlu1 %1169 }
 0x1a7   :  { %v1796_v33 = vpack.c.bf16 %v493_v23, %v492_v63  ;;  %v821_v34 = vmax.f32 %v795_v26, 0.0  ;;  %v464_v58 = vadd.f32 %v463_v31, %v2374_v28  ;;  %v838_v21 = vld [vmem:[#allocation14 + $0x70] sm:$0xff]  ;;  %v839_v23 = vld [vmem:[#allocation14 + $0x78] sm:$0xff]  ;;  %v1165_v25 = vpop.permute.xlu0 %1164 }
 0x1a8   :  { %v495_v36 = vmax.f32 %v469_v57, 0.0  ;;  %v820_v37 = vmax.f32 %v790_v5, 0.0  ;;  %v1631_v38 = vpop.f32.mrb[14].mxu1  ;;  %1765 = vmatprep.subr.bf16.mxu1 %v1764_v30 }
 0x1a9   :  { %v494_v39 = vmax.f32 %v464_v58, 0.0  ;;  %v805_v40 = vadd.f32 %v1631_v38, %v609_v32  ;;  %v1605_v41 = vpop.f32.mrb[14].mxu0  ;;  %1797 = vmatprep.subr.bf16.mxu0 %v1796_v33  ;;  %v799_v42 = vpop.f32.mrb[15].mxu1  ;;  %1767 = vmatpush3.bf16.msra.mxu1 %v1764_v30 }
 0x1aa   :  { %v1768_v20 = vpack.c.bf16 %v821_v34, %v820_v37  ;;  %v479_v43 = vadd.f32 %v1605_v41, %v283_v10  ;;  %v473_v44 = vpop.f32.mrb[15].mxu0  ;;  %v800_v45 = vadd.f32 %v799_v42, %v604_v35  ;;  %1799 = vmatpush3.bf16.msra.mxu0 %v1796_v33  ;;  %v831_v10 = vld [vmem:[#allocation14 + $0x38] sm:$0xff]  ;;  %v1180_v63 = vpop.permute.xlu1 %1179 }
 0x1ab   :  { %v1800_v47 = vpack.c.bf16 %v495_v36, %v494_v39  ;;  %v823_v48 = vmax.f32 %v805_v40, 0.0  ;;  %v474_v59 = vadd.f32 %v473_v44, %v278_v53  ;;  %v835_v53 = vld [vmem:[#allocation14 + $0x58] sm:$0xff]  ;;  %v1175_v26 = vpop.permute.xlu0 %1174 }
 0x1ac   :  { %v497_v28 = vmax.f32 %v479_v43, 0.0  ;;  %v822_v46 = vmax.f32 %v800_v45, 0.0  ;;  %1769 = vmatprep.subr.bf16.mxu1 %v1768_v20 }
 0x1ad   :  { %v496_v60 = vmax.f32 %v474_v59, 0.0  ;;  %1801 = vmatprep.subr.bf16.mxu0 %v1800_v47  ;;  %1771 = vmatpush3.bf16.msra.mxu1 %v1768_v20 }
 0x1ae   :  { %v1772_v61 = vpack.c.bf16 %v823_v48, %v822_v46  ;;  %1803 = vmatpush3.bf16.msra.mxu0 %v1800_v47  ;;  %v1298_v27 = vpop.permute.xlu1 %1297 }
 0x1af   :  { %v1804_v62 = vpack.c.bf16 %v497_v28, %v496_v60  ;;  %v1293_v29 = vpop.permute.xlu0 %1292 }
 0x1b0   :  { %1773 = vmatprep.subr.bf16.mxu1 %v1772_v61 }
 0x1b1   :  { %1805 = vmatprep.subr.bf16.mxu0 %v1804_v62  ;;  %1775 = vmatpush3.bf16.msra.mxu1 %v1772_v61 }
 0x1b2   :  { %1807 = vmatpush3.bf16.msra.mxu0 %v1804_v62  ;;  %v1303_v30 = vpop.permute.xlu1 %1302 }
 0x1b3   :  { %v1185_v57 = vpop.permute.xlu0 %1184 }
 0x1b4   :  { %1665 = vmatmul.mubr.f32.vlgmr.msra.gmra.mrb[16].mxu1 %v841_v0 }
 0x1b5   :  { %1721 = vmatmul.mubr.f32.vlgmr.msra.gmra.mrb[16].mxu0 %v825_v51  ;;  %1667 = vmatprep.mubr.f32.mxu1 %v842_v1 }
 0x1b6   :  { %1723 = vmatprep.mubr.f32.mxu0 %v826_v2  ;;  %v1308_v31 = vpop.permute.xlu1 %1307 }
 0x1b7   :  { %v1190_v5 = vpop.permute.xlu0 %1189 }
 0x1b8   :  { %1668 = vmatmul.mubr.f32.gmra.mrb[18].mxu1 %v843_v3 }
 0x1b9   :  { %1724 = vmatmul.mubr.f32.gmra.mrb[18].mxu0 %v827_v4  ;;  %1670 = vmatprep.mubr.f32.mxu1 %v844_v49 }
 0x1ba   :  { %1726 = vmatprep.mubr.f32.mxu0 %v828_v52  ;;  %v2389_v32 = vpop.permute.xlu1 %1312 }
 0x1bb   :  { %v2391_v33 = vpop.permute.xlu0 %1194 }
 0x1bc   :  { %1671 = vmatmul.mubr.f32.gmra.mrb[20].mxu1 %v845_v6 }
 0x1bd   :  { %1727 = vmatmul.mubr.f32.gmra.mrb[20].mxu0 %v829_v7  ;;  %1673 = vmatprep.mubr.f32.mxu1 %v846_v50 }
 0x1be   :  { %1729 = vmatprep.mubr.f32.mxu0 %v830_v8  ;;  %v1318_v34 = vpop.permute.xlu1 %1317 }
 0x1bf   :  { %v1200_v58 = vpop.permute.xlu0 %1199 }
 0x1c0   :  { %1674 = vmatmul.mubr.f32.gmra.mrb[22].mxu1 %v847_v9 }
 0x1c1   :  { %1730 = vmatmul.mubr.f32.gmra.mrb[22].mxu0 %v831_v10  ;;  %1676 = vmatprep.mubr.f32.mxu1 %v848_v11 }
 0x1c2   :  { %1732 = vmatprep.mubr.f32.mxu0 %v832_v12  ;;  %v2393_v35 = vpop.permute.xlu1 %1322 }
 0x1c3   :  { %v2395_v36 = vpop.permute.xlu0 %1204 }
 0x1c4   :  { %1677 = vmatmul.mubr.f32.gmra.mrb[24].mxu1 %v849_v13 }
 0x1c5   :  { %1733 = vmatmul.mubr.f32.gmra.mrb[24].mxu0 %v833_v55  ;;  %1679 = vmatprep.mubr.f32.mxu1 %v850_v14 }
 0x1c6   :  { %1735 = vmatprep.mubr.f32.mxu0 %v834_v15  ;;  %v2397_v37 = vpop.permute.xlu1 %1327 }
 0x1c7   :  { %v2399_v38 = vpop.permute.xlu0 %1209 }
 0x1c8   :  { %1680 = vmatmul.mubr.f32.gmra.mrb[26].mxu1 %v851_v16 }
 0x1c9   :  { %1736 = vmatmul.mubr.f32.gmra.mrb[26].mxu0 %v835_v53  ;;  %1682 = vmatprep.mubr.f32.mxu1 %v852_v17 }
 0x1ca   :  { %1738 = vmatprep.mubr.f32.mxu0 %v836_v56  ;;  %v2401_v39 = vpop.permute.xlu1 %1332 }
 0x1cb   :  { %v2403_v40 = vpop.permute.xlu0 %1214 }
 0x1cc   :  { %1683 = vmatmul.mubr.f32.gmra.mrb[28].mxu1 %v853_v18 }
 0x1cd   :  { %1739 = vmatmul.mubr.f32.gmra.mrb[28].mxu0 %v837_v19  ;;  %1685 = vmatprep.mubr.f32.mxu1 %v854_v54 }
 0x1ce   :  { %1741 = vmatprep.mubr.f32.mxu0 %v838_v21  ;;  %v2405_v47 = vpop.permute.xlu1 %1337 }
 0x1cf   :  { %v2407_v61 = vpop.permute.xlu0 %1219 }
 0x1d0   :  { %1686 = vmatmul.mubr.f32.gmra.mrb[30].mxu1 %v855_v22 }
 0x1d1   :  { %1742 = vmatmul.mubr.f32.gmra.mrb[30].mxu0 %v839_v23 }
 0x1d2   :  { %v2409_v8 = vpop.permute.xlu1 %1342 }
 0x1d3   :  { %v2413_v15 = vpop.permute.xlu0 %1224 }
 0x287   :  { %v1666_v41 = vpop.f32.mrb[16].mxu1 }
 0x288   :  { %v1722_v42 = vpop.f32.mrb[16].mxu0  ;;  %v922_v20 = vpop.f32.mrb[17].mxu1 }
 0x289   :  { %v1073_v43 = vadd.f32 %v1722_v42, %v1666_v41  ;;  %v1067_v44 = vpop.f32.mrb[17].mxu0 }
 0x28a   :  { %v1068_v45 = vadd.f32 %v1067_v44, %v922_v20  ;;  %v1230_v44 = vpop.permute.xlu0 %1229 }
 0x28b   :  { %v1243_v48 = vadd.f32 %v1170_v24, %v1073_v43  ;;  %v1669_v59 = vpop.f32.mrb[18].mxu1 }
 0x28c   :  { %v1242_v28 = vadd.f32 %v1165_v25, %v1068_v45  ;;  %v1725_v46 = vpop.f32.mrb[18].mxu0  ;;  %v932_v60 = vpop.f32.mrb[19].mxu1 }
 0x28d   :  { %v1259_v62 = vmax.f32 %v1243_v48, 0.0  ;;  %v1083_v0 = vadd.f32 %v1725_v46, %v1669_v59  ;;  %v1077_v51 = vpop.f32.mrb[19].mxu0 }
 0x28e   :  { %v1258_v1 = vmax.f32 %v1242_v28, 0.0  ;;  %v1078_v2 = vadd.f32 %v1077_v51, %v932_v60 }
 0x28f   :  { %v1371_v3 = vmul.f32 %v1298_v27, %v1259_v62  ;;  %v1245_v4 = vadd.f32 %v1180_v63, %v1083_v0  ;;  %v1672_v49 = vpop.f32.mrb[20].mxu1  ;;  %v1348_v27 = vpop.permute.xlu1 %1347 }
 0x290   :  { %v1370_v52 = vmul.f32 %v1293_v29, %v1258_v1  ;;  %v1244_v6 = vadd.f32 %v1175_v26, %v1078_v2  ;;  %v1728_v7 = vpop.f32.mrb[20].mxu0  ;;  %v942_v50 = vpop.f32.mrb[21].mxu1 }
 0x291   :  { %v1387_v9 = vsel %vm611_vm0, %v1371_v3, 0.0  ;;  %v1261_v10 = vmax.f32 %v1245_v4, 0.0  ;;  %v1093_v11 = vadd.f32 %v1728_v7, %v1672_v49  ;;  %v1087_v12 = vpop.f32.mrb[21].mxu0 }
 0x292   :  { %v1386_v13 = vsel %vm611_vm0, %v1370_v52, 0.0  ;;  %v1260_v55 = vmax.f32 %v1244_v6, 0.0  ;;  %v1088_v14 = vadd.f32 %v1087_v12, %v942_v50 }
 0x293   :  { %v1388_v16 = vadd.f32 %v1387_v9, %v1386_v13  ;;  %v1247_v53 = vadd.f32 %v1190_v5, %v1093_v11  ;;  %v1675_v17 = vpop.f32.mrb[22].mxu1  ;;  %v1373_v56 = vmul.f32 %v1308_v31, %v1261_v10  ;;  %v1353_v4 = vpop.permute.xlu1 %1352 }
 0x294   :  { %v1372_v18 = vmul.f32 %v1303_v30, %v1260_v55  ;;  %v1246_v19 = vadd.f32 %v1185_v57, %v1088_v14  ;;  %v1731_v54 = vpop.f32.mrb[22].mxu0  ;;  %v952_v21 = vpop.f32.mrb[23].mxu1 }
 0x295   :  { %v1263_v22 = vmax.f32 %v1247_v53, 0.0  ;;  %v1103_v23 = vadd.f32 %v1731_v54, %v1675_v17  ;;  %v1097_v24 = vpop.f32.mrb[23].mxu0  ;;  %v1391_v20 = vsel %vm611_vm0, %v1373_v56, 0.0  ;;  %v1235_v10 = vpop.permute.xlu0 %1234 }
 0x296   :  { %v1389_v25 = vsel %vm611_vm0, %v1372_v18, 0.0  ;;  %v1262_v63 = vmax.f32 %v1246_v19, 0.0  ;;  %v1098_v26 = vadd.f32 %v1097_v24, %v952_v21 }
 0x297   :  { %v1390_v29 = vadd.f32 %v1389_v25, %v1388_v16  ;;  %v1249_v41 = vadd.f32 %v1200_v58, %v1103_v23  ;;  %v1678_v42 = vpop.f32.mrb[24].mxu1  ;;  %v1375_v5 = vmul.f32 %v1318_v34, %v1263_v22 }
 0x298   :  { %v1374_v31 = vmul.f32 %v2389_v32, %v1262_v63  ;;  %v1248_v30 = vadd.f32 %v2391_v33, %v1098_v26  ;;  %v1734_v57 = vpop.f32.mrb[24].mxu0  ;;  %v962_v43 = vpop.f32.mrb[25].mxu1 }
 0x299   :  { %v1392_v45 = vadd.f32 %v1391_v20, %v1390_v29  ;;  %v1265_v48 = vmax.f32 %v1249_v41, 0.0  ;;  %v1113_v59 = vadd.f32 %v1734_v57, %v1678_v42  ;;  %v1107_v28 = vpop.f32.mrb[25].mxu0  ;;  %v1395_v34 = vsel %vm611_vm0, %v1375_v5, 0.0  ;;  %v1240_v29 = vpop.permute.xlu0 %1239 }
 0x29a   :  { %v1393_v46 = vsel %vm611_vm0, %v1374_v31, 0.0  ;;  %v1264_v60 = vmax.f32 %v1248_v30, 0.0  ;;  %v1108_v62 = vadd.f32 %v1107_v28, %v962_v43 }
 0x29b   :  { %v1394_v58 = vadd.f32 %v1393_v46, %v1392_v45  ;;  %v1251_v0 = vadd.f32 %v2399_v38, %v1113_v59  ;;  %v1681_v51 = vpop.f32.mrb[26].mxu1  ;;  %v1377_v32 = vmul.f32 %v2397_v37, %v1265_v48 }
 0x29c   :  { %v1376_v33 = vmul.f32 %v2393_v35, %v1264_v60  ;;  %v1250_v1 = vadd.f32 %v2395_v36, %v1108_v62  ;;  %v1737_v2 = vpop.f32.mrb[26].mxu0  ;;  %v972_v3 = vpop.f32.mrb[27].mxu1 }
 0x29d   :  { %v1396_v49 = vadd.f32 %v1395_v34, %v1394_v58  ;;  %v1267_v52 = vmax.f32 %v1251_v0, 0.0  ;;  %v1123_v6 = vadd.f32 %v1737_v2, %v1681_v51  ;;  %v1117_v7 = vpop.f32.mrb[27].mxu0  ;;  %v1399_v35 = vsel %vm611_vm0, %v1377_v32, 0.0  ;;  %v1363_v62 = vpop.permute.xlu0 %1362 }
 0x29e   :  { %v1397_v50 = vsel %vm611_vm0, %v1376_v33, 0.0  ;;  %v1266_v9 = vmax.f32 %v1250_v1, 0.0  ;;  %v1118_v38 = vadd.f32 %v1117_v7, %v972_v3 }
 0x29f   :  { %v1398_v11 = vadd.f32 %v1397_v50, %v1396_v49  ;;  %v1253_v12 = vadd.f32 %v2407_v61, %v1123_v6  ;;  %v1684_v37 = vpop.f32.mrb[28].mxu1  ;;  %v1379_v36 = vmul.f32 %v2405_v47, %v1267_v52  ;;  %v1358_v61 = vpop.permute.xlu1 %1357  ;;  %v1424_v50 = vstv %s2466_s10 }
 0x2a0   :  { %v1378_v13 = vmul.f32 %v2401_v39, %v1266_v9  ;;  %v1252_v55 = vadd.f32 %v2403_v40, %v1118_v38  ;;  %v1740_v14 = vpop.f32.mrb[28].mxu0  ;;  %v982_v16 = vpop.f32.mrb[29].mxu1 }
 0x2a1   :  { %v1400_v53 = vadd.f32 %v1399_v35, %v1398_v11  ;;  %v1269_v17 = vmax.f32 %v1253_v12, 0.0  ;;  %v1133_v56 = vadd.f32 %v1740_v14, %v1684_v37  ;;  %v1127_v18 = vpop.f32.mrb[29].mxu0  ;;  %v1403_v47 = vsel %vm611_vm0, %v1379_v36, 0.0 }
 0x2a2   :  { %v1401_v19 = vsel %vm611_vm0, %v1378_v13, 0.0  ;;  %v1268_v54 = vmax.f32 %v1252_v55, 0.0  ;;  %v1128_v21 = vadd.f32 %v1127_v18, %v982_v16 }
 0x2a3   :  { %v1402_v22 = vadd.f32 %v1401_v19, %v1400_v53  ;;  %v1255_v23 = vadd.f32 %v1230_v44, %v1133_v56  ;;  %v1687_v24 = vpop.f32.mrb[30].mxu1  ;;  %v1381_v25 = vmul.f32 %v1348_v27, %v1269_v17  ;;  %v1368_v60 = vpop.permute.xlu1 %1367 }
 0x2a4   :  { %v1380_v39 = vmul.f32 %v2409_v8, %v1268_v54  ;;  %v1254_v40 = vadd.f32 %v2413_v15, %v1128_v21  ;;  %v1743_v63 = vpop.f32.mrb[30].mxu0  ;;  %v992_v26 = vpop.f32.mrb[31].mxu1 }
 0x2a5   :  { %v1404_v41 = vadd.f32 %v1403_v47, %v1402_v22  ;;  %v1271_v42 = vmax.f32 %v1255_v23, 0.0  ;;  %v1143_v20 = vadd.f32 %v1743_v63, %v1687_v24  ;;  %v1137_v5 = vpop.f32.mrb[31].mxu0  ;;  %v1407_v45 = vsel %vm611_vm0, %v1381_v25, 0.0 }
 0x2a6   :  { %v1405_v31 = vsel %vm611_vm0, %v1380_v39, 0.0  ;;  %v1270_v30 = vmax.f32 %v1254_v40, 0.0  ;;  %v1138_v57 = vadd.f32 %v1137_v5, %v992_v26 }
 0x2a7   :  { %v1406_v43 = vadd.f32 %v1405_v31, %v1404_v41  ;;  %v1257_v44 = vadd.f32 %v1240_v29, %v1143_v20  ;;  %v1383_v27 = vmul.f32 %v1358_v61, %v1271_v42 }
 0x2a8   :  { %v1382_v48 = vmul.f32 %v1353_v4, %v1270_v30  ;;  %v1256_v8 = vadd.f32 %v1235_v10, %v1138_v57 }
 0x2a9   :  { %v1408_v59 = vadd.f32 %v1407_v45, %v1406_v43  ;;  %v1273_v15 = vmax.f32 %v1257_v44, 0.0  ;;  %v1411_v0 = vsel %vm611_vm0, %v1383_v27, 0.0 }
 0x2aa   :  { %v1409_v28 = vsel %vm611_vm0, %v1382_v48, 0.0  ;;  %v1272_v46 = vmax.f32 %v1256_v8, 0.0 }
 0x2ab   :  { %v1410_v58 = vadd.f32 %v1409_v28, %v1408_v59  ;;  %v1385_v51 = vmul.f32 %v1368_v60, %v1273_v15 }
 0x2ac   :  { %v1384_v34 = vmul.f32 %v1363_v62, %v1272_v46 }
 0x2ad   :  { %v1412_v32 = vadd.f32 %v1411_v0, %v1410_v58  ;;  %v1415_v2 = vsel %vm611_vm0, %v1385_v51, 0.0 }
 0x2ae   :  { %v1413_v33 = vsel %vm611_vm0, %v1384_v34, 0.0 }
 0x2af   :  { %v1414_v1 = vadd.f32 %v1413_v33, %v1412_v32 }
 0x2b1   :  { %v1416_v3 = vadd.f32 %v1415_v2, %v1414_v1 }
 0x2b3   :  { %v1417_v4 = vrot.slane %v1416_v3, 4 }
 0x2b5   :  { %v1418_v49 = vadd.f32 %v1417_v4, %v1416_v3 }
 0x2b7   :  { %v1419_v52 = vrot.slane %v1418_v49, 2 }
 0x2b9   :  { %v1420_v6 = vadd.f32 %v1419_v52, %v1418_v49 }
 0x2bb   :  { %v1421_v7 = vrot.slane %v1420_v6, 1 }
 0x2bd   :  { %v1422_v9 = vadd.f32 %v1421_v7, %v1420_v6 }
 0x2bf   :  { %v1425_v38 = vadd.f32 %v1424_v50, %v1422_v9 }
 0x2c1   :  { %1427 = vst.msk [vmem:[#allocation20] sm:$0x1] %vm1426_vm2, %v1425_v38 }
 0x2c2   :  { %2071 = shalt.err (!%p2068_p0)
}
 0x2c3   :  { %s2072_s15 = scalar_lea.hbm %s2467_s11, 16 }
 0x2c4   :  { %p2073_p1 = scmp.ne.s32.totalorder %s2467_s11, %s2072_s15  ;;  %p2076_p2 = scmp.lt.u32.totalorder %s2072_s15, %s2467_s11 }
 0x2c6   :  { %p2078_p3 = pnand %p2076_p2, %p2073_p1 }
 0x2c8   :  { %2081 = shalt.err (!%p2078_p3)
}
 0x2c9   :  { %1437 = dma.vmem_to_hbm [thread:$0]  %s1435_s20, 16, %s2467_s11, [#allocation5]  }
 0x2ca   :  { %2094 = dma.done.wait [#allocation5], 16  }
 0x2cb   :  { %2095 = vsyncadd [#allocation5], 4294967280 }
 0x2cc   :  { %1441 = vsyncpa [#allocation4], 1 }
 0x2cd   :  { %1442 = vsyncpa [#allocation7], 1 }
 0x2ce   :  { %1443 = vsyncpa [#allocation10], 1 }
 0x2cf   :  { %1444 = vsyncpa [#allocation13], 1 }
 0x2d0   :  { %1445 = vsyncpa [#allocation16], 1 }
 0x2d1   :  { %1446 = vsyncpa [#allocation19], 1 }
 0x2d2   :  { %1447 = vsyncpa [#allocation5], 1 }

</bundles_post_ra>
